<compile_context>
chip_gen: v7x
topology: tpu7x:2x2x1
jax: 0.10.0
libtpu: 0.0.40
codegen_flags: <defaults>
</compile_context>

<pallas_src>
import jax
import jax.numpy as jnp
from jax.experimental import pallas as pl
from jax.experimental.pallas import tpu as pltpu


def _round_up(x, m):
    return ((x + m - 1) // m) * m


# ----------------------------------------------------------------------------
# Kernel: full T-step rollout, hidden state resident in VMEM scratch
# ----------------------------------------------------------------------------
def rnn_rollout_kernel(x_ref, h0_ref, w1_ref, wih_ref, whh_ref, w2_ref, b_ref,
                       q_ref, hlast_ref, h_scr):
    H = w1_ref.shape[1]          # real hidden width (32)
    HP = h_scr.shape[1]          # padded lane width (128)
    t = pl.program_id(1)

    # Load the initial hidden state once per batch block (t is the innermost grid axis).
    @pl.when(t == 0)
    def _():
        h_scr[...] = h0_ref[...]

    # Bias slab rows: 0 = fc1, 1 = GRU input-side (r|z|n), 2 = GRU hidden-side, 3 = fc2.
    b1 = b_ref[0:1, 0:H]
    b_i = b_ref[1:2, :]
    b_h = b_ref[2:3, :]
    b2 = b_ref[3:4, 0:HP]

    x = x_ref[0]                 # [bm, obs] bf16
    h = h_scr[...]               # [bm, HP]  f32 (padded lanes exactly 0)

    # fc1 + ReLU (bf16 matmul, f32 accumulate)
    a = jnp.maximum(
        jnp.dot(x, w1_ref[...], preferred_element_type=jnp.float32) + b1, 0.0)

    # Fused GRU gate matmuls (2 instead of 6); contraction K = H = 32, gates on 128-lane tiles.
    gi = jnp.dot(a.astype(jnp.bfloat16), wih_ref[...],
                 preferred_element_type=jnp.float32) + b_i
    gh = jnp.dot(h[:, 0:H].astype(jnp.bfloat16), whh_ref[...],
                 preferred_element_type=jnp.float32) + b_h

    r = jax.nn.sigmoid(gi[:, 0:HP] + gh[:, 0:HP])
    z = jax.nn.sigmoid(gi[:, HP:2 * HP] + gh[:, HP:2 * HP])
    n = jnp.tanh(gi[:, 2 * HP:3 * HP] + r * gh[:, 2 * HP:3 * HP])
    h_new = (1.0 - z) * n + z * h        # padded lanes: 0.5*0 + 0.5*0 == 0 (stay clean)

    # fc2 (output lanes padded to HP -> dense 128-lane store)
    q = jnp.dot(h_new[:, 0:H].astype(jnp.bfloat16), w2_ref[...],
                preferred_element_type=jnp.float32) + b2

    h_scr[...] = h_new
    q_ref[0] = q.astype(q_ref.dtype)
    hlast_ref[...] = h_new.astype(hlast_ref.dtype)   # resident across t; flushed after last step


# ----------------------------------------------------------------------------
# Wrappers
# ----------------------------------------------------------------------------
def rnn_agent_rollout(inputs_seq, hidden0, packed, *, hidden_dim, n_actions, hp=128):
    """inputs_seq: [T, B, obs] f32, hidden0: [B, H] f32 -> (q [T, B, A], h_last [B, H])."""
    T, B, obs_dim = inputs_seq.shape
    H, A = hidden_dim, n_actions

    # Pad batch to a sublane multiple; split into 2 "parallel" blocks once the batch is big
    # enough to amortize per-block overhead (engages v7x's second TensorCore).
    B_pad = _round_up(B, 8)
    if B_pad >= 64:
        bm = _round_up((B_pad + 1) // 2, 8)
        B_pad = 2 * bm
    else:
        bm = B_pad
    n_b = B_pad // bm

    x_pad = jnp.zeros((T, B_pad, obs_dim), jnp.bfloat16).at[:, :B].set(
        inputs_seq.astype(jnp.bfloat16))
    h0_pad = jnp.zeros((B_pad, hp), jnp.float32).at[:B, :H].set(hidden0)

    def weight_spec(arr):
        # Constant block index -> single DMA, weights stay resident across the whole grid.
        return pl.BlockSpec(arr.shape, lambda b, t: (0, 0))

    q_pad, h_last_pad = pl.pallas_call(
        rnn_rollout_kernel,
        out_shape=(
            jax.ShapeDtypeStruct((T, B_pad, hp), jnp.float32),
            jax.ShapeDtypeStruct((B_pad, hp), jnp.float32),
        ),
        grid=(n_b, T),
        in_specs=[
            pl.BlockSpec((1, bm, obs_dim), lambda b, t: (t, b, 0)),   # x_t  (streamed per step)
            pl.BlockSpec((bm, hp), lambda b, t: (b, 0)),              # h0   (once per batch block)
            weight_spec(packed["w1"]),                                # W1      [obs, H]
            weight_spec(packed["w_ih"]),                              # W_ih    [H, 3*hp]
            weight_spec(packed["w_hh"]),                              # W_hh    [H, 3*hp]
            weight_spec(packed["w2"]),                                # W2      [H, hp]
            weight_spec(packed["bias"]),                              # biases  [4, 3*hp]
        ],
        out_specs=(
            pl.BlockSpec((1, bm, hp), lambda b, t: (t, b, 0)),        # q_t
            pl.BlockSpec((bm, hp), lambda b, t: (b, 0)),              # final hidden
        ),
        scratch_shapes=[pltpu.VMEM((bm, hp), jnp.float32)],           # carried hidden state
        compiler_params=pltpu.CompilerParams(
            dimension_semantics=("parallel", "arbitrary")),
    )(x_pad, h0_pad, packed["w1"], packed["w_ih"], packed["w_hh"],
      packed["w2"], packed["bias"])

    return q_pad[:, :B, :A], h_last_pad[:B, :H]


def rnn_agent_forward(inputs, hidden_state, packed, *, hidden_dim, n_actions, hp=128):
    """Single-step API matching the PyTorch forward(inputs, hidden_state)."""
    q, h_new = rnn_agent_rollout(inputs[None], hidden_state, packed,
                                 hidden_dim=hidden_dim, n_actions=n_actions, hp=hp)
    return q[0], h_new


# ----------------------------------------------------------------------------
# Parameter construction / packing
# ----------------------------------------------------------------------------
def init_params(key, obs_dim, hidden_dim, n_actions):
    """Deterministic synthetic init. All weights stored as [in, out] (pre-transposed)."""
    ks = jax.random.split(key, 16)
    scale = 0.1

    def w(k, shape):
        return scale * jax.random.normal(k, shape, dtype=jnp.float32)

    H = hidden_dim
    return {
        "w1": w(ks[0], (obs_dim, H)), "b1": w(ks[1], (1, H)),
        "w_ir": w(ks[2], (H, H)), "w_iz": w(ks[3], (H, H)), "w_in": w(ks[4], (H, H)),
        "b_ir": w(ks[5], (1, H)), "b_iz": w(ks[6], (1, H)), "b_in": w(ks[7], (1, H)),
        "w_hr": w(ks[8], (H, H)), "w_hz": w(ks[9], (H, H)), "w_hn": w(ks[10], (H, H)),
        "b_hr": w(ks[11], (1, H)), "b_hz": w(ks[12], (1, H)), "b_hn": w(ks[13], (1, H)),
        "w2": w(ks[14], (H, n_actions)), "b2": w(ks[15], (1, n_actions)),
    }


def pack_params(p, obs_dim, hidden_dim, n_actions, hp):
    """One-time host-side packing: fuse GRU gates, pad only the LANE (output) dims to hp=128,
    keep contraction rows at H (multiple of 8 is enough for f32/bf16), cast weights to bf16."""
    H, A = hidden_dim, n_actions
    bf16 = jnp.bfloat16

    w1 = p["w1"].astype(bf16)                                    # [obs, H]

    def pack_gates(wr, wz, wn):
        out = jnp.zeros((H, 3 * hp), jnp.float32)
        out = out.at[:, 0 * hp:0 * hp + H].set(wr)
        out = out.at[:, 1 * hp:1 * hp + H].set(wz)
        out = out.at[:, 2 * hp:2 * hp + H].set(wn)
        return out.astype(bf16)

    w_ih = pack_gates(p["w_ir"], p["w_iz"], p["w_in"])           # [H, 3*hp]
    w_hh = pack_gates(p["w_hr"], p["w_hz"], p["w_hn"])           # [H, 3*hp]
    w2 = jnp.zeros((H, hp), jnp.float32).at[:, :A].set(p["w2"]).astype(bf16)

    bias = jnp.zeros((4, 3 * hp), jnp.float32)
    bias = bias.at[0, :H].set(p["b1"][0])
    bias = bias.at[1, 0 * hp:0 * hp + H].set(p["b_ir"][0])
    bias = bias.at[1, 1 * hp:1 * hp + H].set(p["b_iz"][0])
    bias = bias.at[1, 2 * hp:2 * hp + H].set(p["b_in"][0])
    bias = bias.at[2, 0 * hp:0 * hp + H].set(p["b_hr"][0])
    bias = bias.at[2, 1 * hp:1 * hp + H].set(p["b_hz"][0])
    bias = bias.at[2, 2 * hp:2 * hp + H].set(p["b_hn"][0])
    bias = bias.at[3, :A].set(p["b2"][0])

    return {"w1": w1, "w_ih": w_ih, "w_hh": w_hh, "w2": w2, "bias": bias}


def reference_rollout(inputs_seq, h0, p):
    """Pure-JAX reference with the SAME bf16 casts at matmul operand boundaries
    (f32 accumulation), so it matches the bf16-weight kernel."""
    bf16 = jnp.bfloat16

    def mm(x, w):
        return jnp.dot(x.astype(bf16), w.astype(bf16),
                       preferred_element_type=jnp.float32)

    def step(h, x):
        a = jnp.maximum(mm(x, p["w1"]) + p["b1"], 0.0)
        r = jax.nn.sigmoid(mm(a, p["w_ir"]) + p["b_ir"] + mm(h, p["w_hr"]) + p["b_hr"])
        z = jax.nn.sigmoid(mm(a, p["w_iz"]) + p["b_iz"] + mm(h, p["w_hz"]) + p["b_hz"])
        n = jnp.tanh(mm(a, p["w_in"]) + p["b_in"] + r * (mm(h, p["w_hn"]) + p["b_hn"]))
        h_new = (1.0 - z) * n + z * h
        q = mm(h_new, p["w2"]) + p["b2"]
        return h_new, q

    h_last, q_seq = jax.lax.scan(step, h0, inputs_seq)
    return q_seq, h_last


if __name__ == "__main__":
    T, B, OBS, H, A = 8, 4, 16, 32, 8
    HP = 128  # padded lane width for hidden / action outputs

    key = jax.random.PRNGKey(0)
    k_in, k_h, k_p = jax.random.split(key, 3)

    inputs_seq = jax.random.normal(k_in, (T, B, OBS), dtype=jnp.float32)
    # PyMARL init_hidden() is zeros; add small noise so the recurrence check is non-trivial.
    hidden0 = 0.01 * jax.random.normal(k_h, (B, H), dtype=jnp.float32)

    params = init_params(k_p, OBS, H, A)
    packed = pack_params(params, OBS, H, A, HP)

    # Fused T-step rollout (one pallas_call, weights resident, hidden carried in VMEM scratch).
    q_seq, h_last = rnn_agent_rollout(inputs_seq, hidden0, packed,
                                      hidden_dim=H, n_actions=A, hp=HP)
    q_seq = jax.block_until_ready(q_seq)
    h_last = jax.block_until_ready(h_last)

    q_ref_seq, h_ref_last = reference_rollout(inputs_seq, hidden0, params)
    assert jnp.allclose(q_seq, q_ref_seq, atol=1e-3, rtol=1e-3), "rollout q mismatch"
    assert jnp.allclose(h_last, h_ref_last, atol=1e-3, rtol=1e-3), "rollout h mismatch"

    # Single-step API parity (matches the original forward(inputs, hidden_state) signature).
    q1, h1 = rnn_agent_forward(inputs_seq[0], hidden0, packed,
                               hidden_dim=H, n_actions=A, hp=HP)
    q1 = jax.block_until_ready(q1)
    h1 = jax.block_until_ready(h1)
    q1_ref, h1_ref = reference_rollout(inputs_seq[:1], hidden0, params)
    assert jnp.allclose(q1, q1_ref[0], atol=1e-3, rtol=1e-3), "step q mismatch"
    assert jnp.allclose(h1, h1_ref, atol=1e-3, rtol=1e-3), "step h mismatch"

    print("KERNEL_OK")
</pallas_src>

<mosaic_0001>
module attributes {stable_mosaic.version = 11 : i64} {
  func.func @rnn_rollout_kernel(%arg0: i32, %arg1: i32, %arg2: memref<1x8x16xbf16, #tpu.memory_space<vmem>>, %arg3: memref<8x128xf32, #tpu.memory_space<vmem>>, %arg4: memref<16x32xbf16, #tpu.memory_space<vmem>>, %arg5: memref<32x384xbf16, #tpu.memory_space<vmem>>, %arg6: memref<32x384xbf16, #tpu.memory_space<vmem>>, %arg7: memref<32x128xbf16, #tpu.memory_space<vmem>>, %arg8: memref<4x384xf32, #tpu.memory_space<vmem>>, %arg9: memref<1x8x128xf32, #tpu.memory_space<vmem>>, %arg10: memref<8x128xf32, #tpu.memory_space<vmem>>, %arg11: memref<8x128xf32, #tpu.memory_space<vmem>>) attributes {dimension_semantics = [#tpu.dimension_semantics<parallel>, #tpu.dimension_semantics<arbitrary>], iteration_bounds = array<i64: 1, 8>, scalar_prefetch = 0 : i64, scratch_operands = 1 : i64, tpu.core_type = #tpu.core_type<tc>, window_params = [{transform_indices = @transform_0, window_bounds = array<i64: 1, 8, 16>}, {transform_indices = @transform_1, window_bounds = array<i64: 8, 128>}, {pipeline_mode = #tpu.pipeline_mode<synchronous>, transform_indices = @transform_2, window_bounds = array<i64: 16, 32>}, {pipeline_mode = #tpu.pipeline_mode<synchronous>, transform_indices = @transform_3, window_bounds = array<i64: 32, 384>}, {pipeline_mode = #tpu.pipeline_mode<synchronous>, transform_indices = @transform_4, window_bounds = array<i64: 32, 384>}, {pipeline_mode = #tpu.pipeline_mode<synchronous>, transform_indices = @transform_5, window_bounds = array<i64: 32, 128>}, {pipeline_mode = #tpu.pipeline_mode<synchronous>, transform_indices = @transform_6, window_bounds = array<i64: 4, 384>}, {transform_indices = @transform_7, window_bounds = array<i64: 1, 8, 128>}, {transform_indices = @transform_8, window_bounds = array<i64: 8, 128>}]} {
    %c0_i32 = arith.constant 0 : i32
    %0 = arith.cmpi eq, %arg1, %c0_i32 : i32
    %1 = arith.extui %0 : i1 to i32
    %c0_i32_0 = arith.constant 0 : i32
    %2 = arith.cmpi ne, %1, %c0_i32_0 : i32
    scf.if %2 {
      %c0_32 = arith.constant 0 : index
      %c0_33 = arith.constant 0 : index
      %64 = vector.load %arg3[%c0_32, %c0_33] : memref<8x128xf32, #tpu.memory_space<vmem>>, vector<8x128xf32>
      %c0_34 = arith.constant 0 : index
      %c0_35 = arith.constant 0 : index
      %65 = vector.load %arg11[%c0_34, %c0_35] : memref<8x128xf32, #tpu.memory_space<vmem>>, vector<8x128xf32>
      tpu.vector_store %arg11[%c0_34, %c0_35], %64 {strides = array<i32>} : memref<8x128xf32, #tpu.memory_space<vmem>>, vector<8x128xf32>,
    } else {
    }
    %c0 = arith.constant 0 : index
    %c0_1 = arith.constant 0 : index
    %3 = vector.load %arg8[%c0, %c0_1] : memref<4x384xf32, #tpu.memory_space<vmem>>, vector<1x32xf32>
    %c1 = arith.constant 1 : index
    %c0_2 = arith.constant 0 : index
    %4 = vector.load %arg8[%c1, %c0_2] : memref<4x384xf32, #tpu.memory_space<vmem>>, vector<1x384xf32>
    %c2 = arith.constant 2 : index
    %c0_3 = arith.constant 0 : index
    %5 = vector.load %arg8[%c2, %c0_3] : memref<4x384xf32, #tpu.memory_space<vmem>>, vector<1x384xf32>
    %c3 = arith.constant 3 : index
    %c0_4 = arith.constant 0 : index
    %6 = vector.load %arg8[%c3, %c0_4] : memref<4x384xf32, #tpu.memory_space<vmem>>, vector<1x128xf32>
    %c0_5 = arith.constant 0 : index
    %c0_6 = arith.constant 0 : index
    %c0_7 = arith.constant 0 : index
    %7 = vector.load %arg2[%c0_5, %c0_6, %c0_7] : memref<1x8x16xbf16, #tpu.memory_space<vmem>>, vector<1x8x16xbf16>
    %8 = vector.shape_cast %7 : vector<1x8x16xbf16> to vector<8x16xbf16>
    %c0_8 = arith.constant 0 : index
    %c0_9 = arith.constant 0 : index
    %9 = vector.load %arg11[%c0_8, %c0_9] : memref<8x128xf32, #tpu.memory_space<vmem>>, vector<8x128xf32>
    %c0_10 = arith.constant 0 : index
    %c0_11 = arith.constant 0 : index
    %10 = vector.load %arg4[%c0_10, %c0_11] : memref<16x32xbf16, #tpu.memory_space<vmem>>, vector<16x32xbf16>
    %cst = arith.constant dense<0.000000e+00> : vector<8x32xf32>
    %11 = tpu.matmul %8, %10, %cst {dimension_numbers = #tpu.dot_dimension_numbers<[1], [0], [0], [1], [0, 0, 1, 1], [], []>} : vector<8x16xbf16>, vector<16x32xbf16>, vector<8x32xf32> -> vector<8x32xf32>
    %12 = vector.broadcast %3 : vector<1x32xf32> to vector<8x32xf32>
    %13 = arith.addf %11, %12 : vector<8x32xf32>
    %cst_12 = arith.constant 0.000000e+00 : f32
    %14 = vector.broadcast %cst_12 : f32 to vector<8x32xf32>
    %15 = arith.maximumf %13, %14 : vector<8x32xf32>
    %16 = arith.truncf %15 : vector<8x32xf32> to vector<8x32xbf16>
    %c0_13 = arith.constant 0 : index
    %c0_14 = arith.constant 0 : index
    %17 = vector.load %arg5[%c0_13, %c0_14] : memref<32x384xbf16, #tpu.memory_space<vmem>>, vector<32x384xbf16>
    %cst_15 = arith.constant dense<0.000000e+00> : vector<8x384xf32>
    %18 = tpu.matmul %16, %17, %cst_15 {dimension_numbers = #tpu.dot_dimension_numbers<[1], [0], [0], [1], [0, 0, 1, 1], [], []>} : vector<8x32xbf16>, vector<32x384xbf16>, vector<8x384xf32> -> vector<8x384xf32>
    %19 = vector.broadcast %4 : vector<1x384xf32> to vector<8x384xf32>
    %20 = arith.addf %18, %19 : vector<8x384xf32>
    %21 = vector.extract_strided_slice %9 {offsets = [0, 0], sizes = [8, 32], strides = [1, 1]} : vector<8x128xf32> to vector<8x32xf32>
    %22 = arith.truncf %21 : vector<8x32xf32> to vector<8x32xbf16>
    %c0_16 = arith.constant 0 : index
    %c0_17 = arith.constant 0 : index
    %23 = vector.load %arg6[%c0_16, %c0_17] : memref<32x384xbf16, #tpu.memory_space<vmem>>, vector<32x384xbf16>
    %cst_18 = arith.constant dense<0.000000e+00> : vector<8x384xf32>
    %24 = tpu.matmul %22, %23, %cst_18 {dimension_numbers = #tpu.dot_dimension_numbers<[1], [0], [0], [1], [0, 0, 1, 1], [], []>} : vector<8x32xbf16>, vector<32x384xbf16>, vector<8x384xf32> -> vector<8x384xf32>
    %25 = vector.broadcast %5 : vector<1x384xf32> to vector<8x384xf32>
    %26 = arith.addf %24, %25 : vector<8x384xf32>
    %27 = vector.extract_strided_slice %20 {offsets = [0, 0], sizes = [8, 128], strides = [1, 1]} : vector<8x384xf32> to vector<8x128xf32>
    %28 = vector.extract_strided_slice %26 {offsets = [0, 0], sizes = [8, 128], strides = [1, 1]} : vector<8x384xf32> to vector<8x128xf32>
    %29 = arith.addf %27, %28 : vector<8x128xf32>
    %30 = arith.negf %29 : vector<8x128xf32>
    %31 = math.exp %30 : vector<8x128xf32>
    %cst_19 = arith.constant 1.000000e+00 : f32
    %32 = vector.broadcast %cst_19 : f32 to vector<8x128xf32>
    %33 = arith.addf %32, %31 : vector<8x128xf32>
    %34 = arith.divf %32, %33 : vector<8x128xf32>
    %35 = vector.extract_strided_slice %20 {offsets = [0, 128], sizes = [8, 128], strides = [1, 1]} : vector<8x384xf32> to vector<8x128xf32>
    %36 = vector.extract_strided_slice %26 {offsets = [0, 128], sizes = [8, 128], strides = [1, 1]} : vector<8x384xf32> to vector<8x128xf32>
    %37 = arith.addf %35, %36 : vector<8x128xf32>
    %38 = arith.negf %37 : vector<8x128xf32>
    %39 = math.exp %38 : vector<8x128xf32>
    %cst_20 = arith.constant 1.000000e+00 : f32
    %40 = vector.broadcast %cst_20 : f32 to vector<8x128xf32>
    %41 = arith.addf %40, %39 : vector<8x128xf32>
    %42 = arith.divf %40, %41 : vector<8x128xf32>
    %43 = vector.extract_strided_slice %20 {offsets = [0, 256], sizes = [8, 128], strides = [1, 1]} : vector<8x384xf32> to vector<8x128xf32>
    %44 = vector.extract_strided_slice %26 {offsets = [0, 256], sizes = [8, 128], strides = [1, 1]} : vector<8x384xf32> to vector<8x128xf32>
    %45 = arith.mulf %34, %44 : vector<8x128xf32>
    %46 = arith.addf %43, %45 : vector<8x128xf32>
    %47 = math.tanh %46 : vector<8x128xf32>
    %cst_21 = arith.constant 1.000000e+00 : f32
    %48 = vector.broadcast %cst_21 : f32 to vector<8x128xf32>
    %49 = arith.subf %48, %42 : vector<8x128xf32>
    %50 = arith.mulf %49, %47 : vector<8x128xf32>
    %51 = arith.mulf %42, %9 : vector<8x128xf32>
    %52 = arith.addf %50, %51 : vector<8x128xf32>
    %53 = vector.extract_strided_slice %52 {offsets = [0, 0], sizes = [8, 32], strides = [1, 1]} : vector<8x128xf32> to vector<8x32xf32>
    %54 = arith.truncf %53 : vector<8x32xf32> to vector<8x32xbf16>
    %c0_22 = arith.constant 0 : index
    %c0_23 = arith.constant 0 : index
    %55 = vector.load %arg7[%c0_22, %c0_23] : memref<32x128xbf16, #tpu.memory_space<vmem>>, vector<32x128xbf16>
    %cst_24 = arith.constant dense<0.000000e+00> : vector<8x128xf32>
    %56 = tpu.matmul %54, %55, %cst_24 {dimension_numbers = #tpu.dot_dimension_numbers<[1], [0], [0], [1], [0, 0, 1, 1], [], []>} : vector<8x32xbf16>, vector<32x128xbf16>, vector<8x128xf32> -> vector<8x128xf32>
    %57 = vector.broadcast %6 : vector<1x128xf32> to vector<8x128xf32>
    %58 = arith.addf %56, %57 : vector<8x128xf32>
    %c0_25 = arith.constant 0 : index
    %c0_26 = arith.constant 0 : index
    %59 = vector.load %arg11[%c0_25, %c0_26] : memref<8x128xf32, #tpu.memory_space<vmem>>, vector<8x128xf32>
    tpu.vector_store %arg11[%c0_25, %c0_26], %52 {strides = array<i32>} : memref<8x128xf32, #tpu.memory_space<vmem>>, vector<8x128xf32>,
    %c0_27 = arith.constant 0 : index
    %c0_28 = arith.constant 0 : index
    %c0_29 = arith.constant 0 : index
    %60 = vector.load %arg9[%c0_27, %c0_28, %c0_29] : memref<1x8x128xf32, #tpu.memory_space<vmem>>, vector<1x8x128xf32>
    %61 = vector.shape_cast %60 : vector<1x8x128xf32> to vector<8x128xf32>
    %62 = vector.shape_cast %58 : vector<8x128xf32> to vector<1x8x128xf32>
    tpu.vector_store %arg9[%c0_27, %c0_28, %c0_29], %62 {strides = array<i32>} : memref<1x8x128xf32, #tpu.memory_space<vmem>>, vector<1x8x128xf32>,
    %c0_30 = arith.constant 0 : index
    %c0_31 = arith.constant 0 : index
    %63 = vector.load %arg10[%c0_30, %c0_31] : memref<8x128xf32, #tpu.memory_space<vmem>>, vector<8x128xf32>
    tpu.vector_store %arg10[%c0_30, %c0_31], %52 {strides = array<i32>} : memref<8x128xf32, #tpu.memory_space<vmem>>, vector<8x128xf32>,
    return
  }
  func.func @transform_0(%arg0: i32, %arg1: i32) -> (i32, i32, i32) {
    %c0_i32 = arith.constant 0 : i32
    %c0_i32_0 = arith.constant 0 : i32
    return %arg1, %arg0, %c0_i32 : i32, i32, i32
  }
  func.func @transform_1(%arg0: i32, %arg1: i32) -> (i32, i32) {
    %c0_i32 = arith.constant 0 : i32
    %c0_i32_0 = arith.constant 0 : i32
    return %arg0, %c0_i32 : i32, i32
  }
  func.func @transform_2(%arg0: i32, %arg1: i32) -> (i32, i32) {
    %c0_i32 = arith.constant 0 : i32
    %c0_i32_0 = arith.constant 0 : i32
    %c0_i32_1 = arith.constant 0 : i32
    return %c0_i32, %c0_i32_0 : i32, i32
  }
  func.func @transform_3(%arg0: i32, %arg1: i32) -> (i32, i32) {
    %c0_i32 = arith.constant 0 : i32
    %c0_i32_0 = arith.constant 0 : i32
    %c0_i32_1 = arith.constant 0 : i32
    return %c0_i32, %c0_i32_0 : i32, i32
  }
  func.func @transform_4(%arg0: i32, %arg1: i32) -> (i32, i32) {
    %c0_i32 = arith.constant 0 : i32
    %c0_i32_0 = arith.constant 0 : i32
    %c0_i32_1 = arith.constant 0 : i32
    return %c0_i32, %c0_i32_0 : i32, i32
  }
  func.func @transform_5(%arg0: i32, %arg1: i32) -> (i32, i32) {
    %c0_i32 = arith.constant 0 : i32
    %c0_i32_0 = arith.constant 0 : i32
    %c0_i32_1 = arith.constant 0 : i32
    return %c0_i32, %c0_i32_0 : i32, i32
  }
  func.func @transform_6(%arg0: i32, %arg1: i32) -> (i32, i32) {
    %c0_i32 = arith.constant 0 : i32
    %c0_i32_0 = arith.constant 0 : i32
    %c0_i32_1 = arith.constant 0 : i32
    return %c0_i32, %c0_i32_0 : i32, i32
  }
  func.func @transform_7(%arg0: i32, %arg1: i32) -> (i32, i32, i32) {
    %c0_i32 = arith.constant 0 : i32
    %c0_i32_0 = arith.constant 0 : i32
    return %arg1, %arg0, %c0_i32 : i32, i32, i32
  }
  func.func @transform_8(%arg0: i32, %arg1: i32) -> (i32, i32) {
    %c0_i32 = arith.constant 0 : i32
    %c0_i32_0 = arith.constant 0 : i32
    return %arg0, %c0_i32 : i32, i32
  }
}

</mosaic_0001>

<bundles_post_ra>
// kernel: tpu_custom_call.1
= control target key start
LH: loop header
LB: loop body
LE: loop exit
PB: predicated region body
PF: predicated region fallthrough
CT: control target
= control target key end

     0   :  { %s2007_s0 = inlined_call_operand.hbm [shape: bf16[8,8,16], index: 0, kind: input, shape index: {}]   ;;  %s2008_s1 = inlined_call_operand.hbm [shape: f32[8,128], index: 1, kind: input, shape index: {}]   ;;  %s2009_s2 = inlined_call_operand.hbm [shape: bf16[16,32], index: 2, kind: input, shape index: {}]   ;;  %s2010_s3 = inlined_call_operand.hbm [shape: bf16[32,384], index: 3, kind: input, shape index: {}]   ;;  %s2011_s4 = inlined_call_operand.hbm [shape: bf16[32,384], index: 4, kind: input, shape index: {}]   ;;  %s2012_s5 = inlined_call_operand.vmem [shape: bf16[32,128], index: 5, kind: input, shape index: {}]   ;;  %s2013_s6 = inlined_call_operand.hbm [shape: f32[4,384], index: 6, kind: input, shape index: {}]   ;;  %s2014_s7 = inlined_call_operand.hbm [shape: f32[8,8,128], index: 7, kind: output, shape index: {0}]   ;;  %s2015_s8 = inlined_call_operand.hbm [shape: f32[8,128], index: 8, kind: output, shape index: {1}]  }
   0x1   :  { %2027 = sst [smem:[#allocation23_spill]] %s2008_s1 }
   0x2   :  { %2028 = sst [smem:[#allocation24_spill]] %s2010_s3 }
   0x3   :  { %2029 = sst [smem:[#allocation25_spill]] %s2014_s7 }
   0x4   :  { %2030 = sst [smem:[#allocation26_spill]] %s2015_s8 }
   0x5   :  { %14 = vsyncpa [#allocation4], 0 }
   0x6   :  { %16 = vsyncpa [#allocation4 + $0x1], 0 }
   0x7   :  { %17 = vsyncpa [#allocation7], 0 }
   0x8   :  { %18 = vsyncpa [#allocation10], 0 }
   0x9   :  { %19 = vsyncpa [#allocation13], 0 }
   0xa   :  { %20 = vsyncpa [#allocation5], 0 }
   0xb   :  { %22 = vsyncpa [#allocation5 + $0x1], 0 }
   0xc   :  { %23 = vsyncpa [#allocation16], 0  ;;  %s1644_s27 = smov 0   ;;  %s1646_s28 = smov 0  }
   0xd   :  { %s1648_s29 = smov 0   ;;  %s1650_s30 = smov 0  }
   0xe   :  { %s1652_s9 = smov 0   ;;  %s1654_s10 = smov 0  }
   0xf LB: > { %s2019_s11 = sadd.s32 4294967295, %s1582_s10   ;;  %p1034_p0 = scmp.ge.s32.totalorder %s1582_s10, 1  ;;  %s1582_s10 = sphi %s1654_s10, %s29_s10   ;;  %s1578_s9 = sphi %s1652_s9, %s2058_s9   ;;  %s1574_s30 = sphi %s1650_s30, %s2057_s30   ;;  %s1570_s29 = sphi %s1648_s29, %s2056_s29   ;;  %s1566_s28 = sphi %s1646_s28, %s2055_s28   ;;  %s1562_s27 = sphi %s1644_s27, %s2054_s27  }
  0x10   : > { %p1678_p1 = scmp.eq.s32.totalorder %s2019_s11, 0  ;;  %p259_p2 = scmp.lt.s32.totalorder %s1582_s10, 9 }
  0x11   : > { %s1584_s14 = smov [#allocation6]   ;;  %s1585_s16 = smov [#allocation9]  }
  0x12   : > { %s2031_s12 = scalar_select %p1678_p1, 1, 0 }
  0x13   : > { %p1683_p3 = pnand %p1034_p0, %p259_p2  ;;  %s274_s15 = sshll.u32 %s1584_s14, 4  ;;  %s275_s15 = int_to_ptr.vmem [resolvable:$true] %s274_s15 }
  0x14   : > { %s297_s17 = sshll.u32 %s1585_s16, 4  ;;  %s1586_s19 = smov [#allocation8]   ;;  %s1695_s17 = int_to_ptr.vmem [resolvable:$true] %s297_s17 }
  0x15   : > { %s2032_s13 = scalar_select %p1683_p3, 1, 0 }
  0x16   : > { %p1160_p4 = pneg %p1683_p3  ;;  %s1697_s20 = sshll.u32 %s1586_s19, 4  ;;  %s285_s20 = int_to_ptr.vmem [resolvable:$true] %s1697_s20 }
  0x17   : > { %s2034_s1 = sld [smem:[#allocation23_spill]] }
  0x18   : > { %p1691_p5 = pnand %p1160_p4, %p1678_p1 }
  0x1a   : > { %p1707_p7 = pneg %p1691_p5 }
  0x1d   : > { %s1288_s23 = scalar_lea.hbm %s2034_s1, 128 }
  0x1e   : > { %p1289_p6 = scmp.ne.s32.totalorder %s2034_s1, %s1288_s23  ;;  %p1295_p10 = scmp.lt.u32.totalorder %s1288_s23, %s2034_s1 }
  0x20   : > { %p1291_p8 = pnand %p1707_p7, %p1289_p6 }
  0x22   : > { %p1292_p9 = pneg %p1291_p8 }
  0x24   : > { %p1297_p11 = pnand %p1295_p10, %p1292_p9 }
  0x26   : > { %1300 = shalt.err (!%p1297_p11)
}
  0x27   : > { %s1301_s19 = scalar_lea.vmem %s275_s15, 128  ;;  %p1309_p2 = scmp.lt.s32.totalorder %s275_s15, %s275_s15 }
  0x28   : > { %p1302_p12 = scmp.ne.s32.totalorder %s275_s15, %s1301_s19  ;;  %p1310_p4 = scmp.lt.s32.totalorder %s1301_s19, %s1301_s19 }
  0x2a   : > { %p1304_p13 = pnand %p1302_p12, %p1707_p7  ;;  %p1311_p3 = por %p1310_p4, %p1309_p2 }
  0x2c   : > { %p1305_p0 = pneg %p1304_p13 }
  0x2e   : > { %p1312_p1 = pnand %p1311_p3, %p1305_p0 }
  0x30   : > { %1315 = shalt.err (!%p1312_p1)
}
  0x31   : > { %1163 = dma.hbm_to_vmem [thread:$0]  (!%p1691_p5), %s2034_s1, 128, %s275_s15, [#allocation7]  }
  0x32   : > { %s2036_s3 = sld [smem:[#allocation24_spill]] }
  0x38   : > { %s1316_s25 = scalar_lea.hbm %s2036_s3, 768 }
  0x39   : > { %p1317_p6 = scmp.ne.s32.totalorder %s2036_s3, %s1316_s25  ;;  %p1323_p1 = scmp.lt.u32.totalorder %s1316_s25, %s2036_s3 }
  0x3b   : > { %p1319_p8 = pnand %p1317_p6, %p1707_p7 }
  0x3d   : > { %p1320_p9 = pneg %p1319_p8 }
  0x3f   : > { %p1325_p3 = pnand %p1323_p1, %p1320_p9 }
  0x41   : > { %1328 = shalt.err (!%p1325_p3)
}
  0x42   : > { %s1329_s15 = scalar_lea.vmem %s1695_s17, 768  ;;  %p1337_p13 = scmp.lt.s32.totalorder %s1695_s17, %s1695_s17 }
  0x43   : > { %p1330_p10 = scmp.ne.s32.totalorder %s1695_s17, %s1329_s15  ;;  %p1338_p0 = scmp.lt.s32.totalorder %s1329_s15, %s1329_s15 }
  0x45   : > { %p1332_p11 = pnand %p1330_p10, %p1707_p7  ;;  %p1339_p2 = por %p1338_p0, %p1337_p13 }
  0x47   : > { %p1333_p12 = pneg %p1332_p11 }
  0x49   : > { %p1340_p4 = pnand %p1339_p2, %p1333_p12 }
  0x4b   : > { %1343 = shalt.err (!%p1340_p4)
}
  0x4c   : > { %s2020_s21 = smov 192   ;;  %s2021_s11 = smov 12  }
  0x4d   : > { %1169 = dma.hbm_to_vmem [thread:$0]  (!%p1691_p5), %s2036_s3, 768, %s1695_s17, [#allocation10], %s2020_s21, %s2020_s21, %s2021_s11  }
  0x4e   : > { %s1344_s14 = scalar_lea.hbm %s2009_s2, 128 }
  0x4f   : > { %p1345_p6 = scmp.ne.s32.totalorder %s2009_s2, %s1344_s14  ;;  %p1351_p1 = scmp.lt.u32.totalorder %s1344_s14, %s2009_s2 }
  0x51   : > { %p1347_p8 = pnand %p1345_p6, %p1707_p7 }
  0x53   : > { %p1348_p9 = pneg %p1347_p8 }
  0x55   : > { %p1353_p3 = pnand %p1351_p1, %p1348_p9 }
  0x57   : > { %1356 = shalt.err (!%p1353_p3)
}
  0x58   : > { %s1357_s22 = scalar_lea.vmem %s285_s20, 128  ;;  %p1365_p13 = scmp.lt.s32.totalorder %s285_s20, %s285_s20 }
  0x59   : > { %p1358_p10 = scmp.ne.s32.totalorder %s285_s20, %s1357_s22  ;;  %p1366_p0 = scmp.lt.s32.totalorder %s1357_s22, %s1357_s22 }
  0x5b   : > { %p1360_p11 = pnand %p1358_p10, %p1707_p7  ;;  %p1367_p2 = por %p1366_p0, %p1365_p13 }
  0x5d   : > { %p1361_p12 = pneg %p1360_p11 }
  0x5f   : > { %p1368_p4 = pnand %p1367_p2, %p1361_p12 }
  0x61   : > { %1371 = shalt.err (!%p1368_p4)
}
  0x62   : > { %s1589_s17 = smov 64   ;;  %s1590_s23 = smov 4  }
  0x63   : > { %1166 = dma.hbm_to_vmem [thread:$0]  (!%p1691_p5), %s2009_s2, 128, %s285_s20, [#allocation7], %s1589_s17, %s1589_s17, %s1590_s23  }
  0x64   : > { %s1591_s25 = smov [#allocation11]   ;;  %s1592_s16 = smov [#allocation12]  }
  0x65   : > { %s310_s14 = sshll.u32 %s1591_s25, 4  ;;  %s327_s19 = sshll.u32 %s1592_s16, 4  ;;  %s311_s14 = int_to_ptr.vmem [resolvable:$true] %s310_s14  ;;  %s328_s19 = int_to_ptr.vmem [resolvable:$true] %s327_s19 }
  0x66   : > { %s1372_s22 = scalar_lea.hbm %s2011_s4, 768 }
  0x67   : > { %p1373_p6 = scmp.ne.s32.totalorder %s2011_s4, %s1372_s22  ;;  %p1379_p1 = scmp.lt.u32.totalorder %s1372_s22, %s2011_s4 }
  0x69   : > { %p1375_p8 = pnand %p1373_p6, %p1707_p7 }
  0x6b   : > { %p1376_p9 = pneg %p1375_p8 }
  0x6d   : > { %p1381_p3 = pnand %p1379_p1, %p1376_p9 }
  0x6f   : > { %1384 = shalt.err (!%p1381_p3)
}
  0x70   : > { %s1385_s20 = scalar_lea.vmem %s311_s14, 768  ;;  %p1393_p13 = scmp.lt.s32.totalorder %s311_s14, %s311_s14 }
  0x71   : > { %p1386_p10 = scmp.ne.s32.totalorder %s311_s14, %s1385_s20  ;;  %p1394_p0 = scmp.lt.s32.totalorder %s1385_s20, %s1385_s20 }
  0x73   : > { %p1388_p11 = pnand %p1386_p10, %p1707_p7  ;;  %p1395_p2 = por %p1394_p0, %p1393_p13 }
  0x75   : > { %p1389_p12 = pneg %p1388_p11 }
  0x77   : > { %p1396_p4 = pnand %p1395_p2, %p1389_p12 }
  0x79   : > { %1399 = shalt.err (!%p1396_p4)
}
  0x7a   : > { %s2037_s3 = smov 12   ;;  %s2038_s21 = smov 192  }
  0x7b   : > { %1172 = dma.hbm_to_vmem [thread:$0]  (!%p1691_p5), %s2011_s4, 768, %s311_s14, [#allocation10], %s2038_s21, %s2038_s21, %s2037_s3  }
  0x7c   : > { %s1400_s23 = scalar_lea.hbm %s2013_s6, 192 }
  0x7d   : > { %p1401_p6 = scmp.ne.s32.totalorder %s2013_s6, %s1400_s23  ;;  %p1407_p1 = scmp.lt.u32.totalorder %s1400_s23, %s2013_s6 }
  0x7f   : > { %p1403_p8 = pnand %p1401_p6, %p1707_p7 }
  0x81   : > { %p1404_p9 = pneg %p1403_p8 }
  0x83   : > { %p1409_p3 = pnand %p1407_p1, %p1404_p9 }
  0x85   : > { %1412 = shalt.err (!%p1409_p3)
}
  0x86   : > { %s1413_s15 = scalar_lea.vmem %s328_s19, 192  ;;  %p1421_p13 = scmp.lt.s32.totalorder %s328_s19, %s328_s19 }
  0x87   : > { %p1414_p10 = scmp.ne.s32.totalorder %s328_s19, %s1413_s15  ;;  %p1422_p0 = scmp.lt.s32.totalorder %s1413_s15, %s1413_s15 }
  0x89   : > { %p1416_p11 = pnand %p1414_p10, %p1707_p7  ;;  %p1423_p2 = por %p1422_p0, %p1421_p13 }
  0x8b   : > { %p1417_p12 = pneg %p1416_p11 }
  0x8d   : > { %p1424_p4 = pnand %p1423_p2, %p1417_p12 }
  0x8f   : > { %1427 = shalt.err (!%p1424_p4)
}
  0x90   : > { %1175 = dma.hbm_to_vmem [thread:$0]  (!%p1691_p5), %s2013_s6, 192, %s328_s19, [#allocation13]  }
  0x91   : > { %s1033_s26 = sadd.s32 4294967294, %s1582_s10   ;;  %s38_s20 = sadd.s32 1, %s1578_s9 }
  0x92   : > { %s50_s18 = sadd.s32 1, %s1570_s29  ;;  %p39_p7 = scmp.ge.s32.totalorder %s38_s20, 8 }
  0x93   : > { %p57_p6 = scmp.ne.s32.totalorder %s1570_s29, %s1566_s28  ;;  %p58_p8 = scmp.eq.s32.totalorder %s1582_s10, 0 }
  0x94   : > { %p63_p9 = scmp.ne.s32.totalorder %s1566_s28, %s1562_s27  ;;  %s2060_s20 = smov (%p39_p7, %s38_s20), 0 }
  0x95   : > { %p1817_p1 = por %p58_p8, %p57_p6  ;;  %p2040_p3 = scmp.ne.s32.totalorder %s2031_s12, 0 }
  0x96   : > { %s45_s21 = ssub.s32 %s1578_s9, %s2060_s20  ;;  %s2042_s7 = sadd.s32 4294967295, %s1582_s10  }
  0x97   : > { %p1823_p5 = por %p2040_p3, %p63_p9  ;;  %p1831_p10 = scmp.eq.s32.totalorder %s2042_s7, 7 }
  0x98   : > { %p48_p11 = scmp.eq.s32.totalorder %s45_s21, 0  ;;  %p226_p12 = scmp.eq.s32.totalorder %s1033_s26, 7 }
  0x99   : > { %s2043_s8 = scalar_select %p1831_p10, 1, 0 }
  0x9a   : > { %p1837_p13 = por %p1831_p10, %p57_p6  ;;  %p1189_p0 = scmp.lt.s32.totalorder %s1582_s10, 8 }
  0x9b   : > { %s1843_s17 = scalar_select %p48_p11, %s1570_s29, %s50_s18  }
  0x9c   : > { %s2044_s11 = scalar_select %p1837_p13, 1, 0 }
  0x9d   : > { %p1845_p2 = por %p226_p12, %p63_p9  ;;  %s338_s1 = sand.u32 1, %s1570_s29  }
  0x9e   : > { %s1041_s24 = sshll.u32 %s338_s1, 2  ;;  %s1042_s25 = sshll.u32 %s1578_s9, 6 }
  0x9f   : > { %s2045_s23 = scalar_select %p1845_p2, 1, 0 }
  0xa0   : > { %s1854_s14 = scalar_lea.hbm %s2007_s0, %s1042_s25  ;;  %s342_s22 = scalar_lea.vmem [#allocation3], %s1041_s24 }
  0xa1   : > { %s350_s26 = sshll.u32 %s342_s22, 4  ;;  %p1860_p4 = pnand %p1189_p0, %p1817_p1  ;;  %s1856_s26 = int_to_ptr.vmem [resolvable:$true] %s350_s26 }
  0xa2   : > { %s339_s21 = scalar_lea.sflag [#allocation4], %s338_s1  ;;  %s1428_s7 = scalar_lea.hbm %s1854_s14, 64 }
  0xa3   : > { %p1429_p7 = scmp.ne.s32.totalorder %s1854_s14, %s1428_s7  ;;  %p1430_p6 = pneg %p1860_p4 }
  0xa4   : > { %s1433_s16 = scalar_lea.hbm %s2007_s0, 512  ;;  %p1434_p1 = scmp.lt.u32.totalorder %s1854_s14, %s2007_s0 }
  0xa5   : > { %p1431_p8 = pnand %p1430_p6, %p1429_p7  ;;  %p1435_p3 = scmp.lt.u32.totalorder %s1433_s16, %s1428_s7 }
  0xa6   : > { %p1437_p12 = scmp.lt.u32.totalorder %s1428_s7, %s1854_s14 }
  0xa7   : > { %p1432_p9 = pneg %p1431_p8  ;;  %p1436_p11 = por %p1435_p3, %p1434_p1 }
  0xa9   : > { %p1438_p0 = por %p1437_p12, %p1436_p11 }
  0xab   : > { %p1439_p2 = pnand %p1438_p0, %p1432_p9 }
  0xad   : > { %1442 = shalt.err (!%p1439_p2)
}
  0xae   : > { %s1443_s1 = scalar_lea.vmem %s1856_s26, 64  ;;  %s1593_s22 = smov [#allocation3]  }
  0xaf   : > { %p1444_p7 = scmp.ne.s32.totalorder %s1856_s26, %s1443_s1  ;;  %s1448_s24 = sshll.u32 %s1593_s22, 4  ;;  %s1449_s24 = int_to_ptr.vmem [resolvable:$false] %s1448_s24 }
  0xb0   : > { %s1450_s25 = scalar_lea.vmem %s1449_s24, 128  ;;  %p1451_p10 = scmp.lt.s32.totalorder %s1856_s26, %s1449_s24 }
  0xb1   : > { %p1446_p8 = pnand %p1444_p7, %p1430_p6  ;;  %p1452_p1 = scmp.lt.s32.totalorder %s1450_s25, %s1443_s1 }
  0xb3   : > { %p1447_p13 = pneg %p1446_p8  ;;  %p1453_p3 = por %p1452_p1, %p1451_p10 }
  0xb5   : > { %p1454_p11 = pnand %p1453_p3, %p1447_p13 }
  0xb7   : > { %1457 = shalt.err (!%p1454_p11)
}
  0xb8   : > { %1179 = dma.hbm_to_vmem [thread:$0]  (!%p1860_p4), %s1854_s14, 64, %s1856_s26, %s339_s21  }
  0xb9   : > { %p2047_p2 = scmp.ne.s32.totalorder %s2032_s13, 0 }
  0xba   : > { %s1892_s7 = sand.u32 (!%p2047_p2), 1, %s1566_s28  }
  0xbb   : > { %359 = sbr.rel (%p2047_p2) target bundleno = 937 (0x3a9), region = 48  ;;  %s1044_s16 = sshll.u32 (!%p2047_p2), %s1892_s7, 2 }
  0xbc   : > { %s362_s3 = scalar_lea.sflag (!%p2047_p2), [#allocation4], %s1892_s7  ;;  %s365_s15 = scalar_lea.vmem (!%p2047_p2), [#allocation3], %s1044_s16 }
  0xc2   : > { %1537 = dma.done.wait (%p1823_p5), %s362_s3, 64  }
  0xc3   : > { %1539 = vsyncadd (%p1823_p5), %s362_s3, 4294967232  ;;  %p2048_p10 = scmp.ne.s32.totalorder %s2031_s12, 0 }
  0xc5   : > { %1541 = dma.done.wait (%p2048_p10), [#allocation7], 256  }
  0xc6   : > { %1543 = vsyncadd (%p2048_p10), [#allocation7], 4294967040 }
  0xc7   : > { %1545 = dma.done.wait (%p2048_p10), [#allocation10], 1536  }
  0xc8   : > { %1547 = vsyncadd (%p2048_p10), [#allocation10], 4294965760 }
  0xc9   : > { %1549 = dma.done.wait (%p2048_p10), [#allocation13], 192  }
  0xca   : > { %1551 = vsyncadd (%p2048_p10), [#allocation13], 4294967104  ;;  %s1050_s13 = sshll.u32 %s1892_s7, 3  ;;  %p1051_p5 = scmp.ne.s32.totalorder %s1574_s30, 0 }
  0xcb   : > { %s1913_s19 = scalar_lea.vmem [#allocation14], %s1050_s13  ;;  %v423_v0 = vld [vmem:[#allocation6] sm:$0xff] (!%p1051_p5) }
  0xcc   : > { %422 = sbr.rel (%p1051_p5) target bundleno = 211 (0xd3), region = 76  ;;  %424 = vst [vmem:[#allocation2] sm:$0xff] (!%p1051_p5), %v423_v0 }
  0xd3 PF: > { %v1259_v1 = vld [vmem:[#allocation8] sm:$0xff]   ;;  %v1594_v2 = vmov 0.0   ;;  %v431_v3 = vld [vmem:[%s365_s15] sm:$0xf]  ;;  %vm1595_vm0 = vmmov 0   ;;  %vm445_vm1 = vcmask 130048   ;;  %v500_v29 = vlaneseq }
  0xd4   : > { %1094 = vmatprep.subr.bf16.mxu0 %v1594_v2  ;;  %1096 = vmatprep.mubr.msk.bf16.mxu0 %vm1595_vm0, %v1594_v2  ;;  %v1260_v4 = vld [vmem:[#allocation9 + $0x4] ss:$12 sps:$4 sm:$0xff]   ;;  %v1262_v5 = vld [vmem:[#allocation9] ss:$12 sps:$4 sm:$0xff]   ;;  %v1263_v6 = vld [vmem:[#allocation9 + $0x8] ss:$12 sps:$4 sm:$0xff]  }
  0xd5   : > { %1095 = vmatpush3.bf16.msra.mxu0 %v1259_v1  ;;  %551 = vmatprep.subr.bf16.mxu1 %v1260_v4  ;;  %v1264_v7 = vld [vmem:[#allocation9 + $0x1c] ss:$12 sps:$4 sm:$0xff]   ;;  %v1266_v8 = vld [vmem:[#allocation9 + $0x18] ss:$12 sps:$4 sm:$0xff]   ;;  %v1267_v9 = vld [vmem:[#allocation9 + $0x20] ss:$12 sps:$4 sm:$0xff]  }
  0xd6   : > { %1100 = vmatprep.subr.bf16.mxu0 %v1594_v2  ;;  %552 = vmatpush1.bf16.msra.mxu1 %v1262_v5  ;;  %v1270_v10 = vld [vmem:[#allocation11 + $0x4] ss:$12 sps:$4 sm:$0xff]   ;;  %v1596_v11 = vmov 0   ;;  %v1268_v19 = vld [vmem:[#allocation11] ss:$12 sps:$4 sm:$0xff]   ;;  %vm547_vm2 = vcmask 261120  }
  0xd7   : > { %553 = vmatprep.subr.bf16.mxu1 %v1264_v7  ;;  %583 = vmatprep.mubr.bf16.mxu1 %v1596_v11  ;;  %v1052_v12 = vld [vmem:[#allocation12] ss:$0 sm:$0xff]  ;;  %v1273_v21 = vld [vmem:[#allocation11 + $0x1c] ss:$12 sps:$4 sm:$0xff]   ;;  %v1271_v23 = vld [vmem:[#allocation11 + $0x18] ss:$12 sps:$4 sm:$0xff]  }
  0xd8   : > { %1097 = vmatmul.mubr.msk.bf16.vlgmr.msra.gmra.mrb[0].mxu0 %vm445_vm1, %v431_v3  ;;  %v1274_v22 = vld [vmem:[#allocation11 + $0x8] ss:$12 sps:$4 sm:$0xff]   ;;  %v1275_v24 = vld [vmem:[#allocation11 + $0x20] ss:$12 sps:$4 sm:$0xff]   ;;  %v1277_v28 = vld [vmem:[%s2012_s5 + $0x8] sm:$0xff]   ;;  %v501_v30 = vshrl.u32 %v500_v29, 7 }
  0xd9   : > { %1104 = vmatprep.mubr.msk.bf16.mxu0 %vm1595_vm0, %v1594_v2  ;;  %1101 = vmatpush3.bf16.msra.mxu0 %v1263_v6  ;;  %v432_v25 = vld [vmem:[#allocation2] sm:$0xff]  ;;  %s1597_s21 = smov [#allocation15]   ;;  %p2049_p4 = scmp.ne.s32.totalorder %s2043_s8, 0 }
  0xda   : > { %1102 = vmatprep.subr.bf16.mxu0 %v1594_v2  ;;  %554 = vmatpush1.bf16.msra.mxu1 %v1266_v8  ;;  %v632_v26 = vpack.c.bf16 %v432_v25, %v432_v25  ;;  %v1276_v27 = vld [vmem:[%s2012_s5] sm:$0xff]   ;;  %v502_v33 = vsub.s32 0, %v501_v30  ;;  %v506_v38 = vsub.s32 1, %v501_v30  ;;  %v510_v59 = vsub.s32 2, %v501_v30  ;;  %s889_s1 = sshll.u32 %s1597_s21, 4  ;;  %s890_s1 = int_to_ptr.vmem [resolvable:$true] %s889_s1 }
  0xdb   : > { %692 = vmatprep.subr.bf16.mxu1 %v1270_v10  ;;  %v429_v35 = vld [vmem:[#allocation12 + $0x2] ss:$4 sm:$0x7]  ;;  %v427_v37 = vld [vmem:[#allocation12 + $0x1] ss:$4 sm:$0x7]  ;;  %p1465_p12 = scmp.lt.s32.totalorder %s890_s1, %s890_s1 }
  0xdc   : > { %v503_v39 = vrot.slane %v427_v37, %v502_v33  ;;  %v645_v40 = vrot.slane %v429_v35, %v502_v33  ;;  %v507_v41 = vrot.slane %v427_v37, %v506_v38  ;;  %v649_v42 = vrot.slane %v429_v35, %v506_v38  ;;  %s1458_s22 = scalar_lea.vmem %s890_s1, 128 }
  0xdd   : > { %1103 = vmatpush3.bf16.msra.mxu0 %v1267_v9  ;;  %v653_v60 = vrot.slane %v429_v35, %v510_v59  ;;  %v511_v62 = vrot.slane %v427_v37, %v510_v59  ;;  %p1459_p13 = scmp.ne.s32.totalorder %s890_s1, %s1458_s22  ;;  %p1466_p0 = scmp.lt.s32.totalorder %s1458_s22, %s1458_s22 }
  0xde   : > { %1108 = vmatprep.subr.bf16.mxu0 %v1594_v2  ;;  %v1124_v43 = vadd.f32 %v645_v40, %v503_v39  ;;  %v1126_v48 = vadd.f32 %v649_v42, %v507_v41 }
  0xdf   : > { %p1460_p6 = pnand %p1459_p13, %p2049_p4  ;;  %p1467_p7 = por %p1466_p0, %p1465_p12 }
  0xe1   : > { %p1461_p9 = pneg %p1460_p6 }
  0xe3   : > { %p1468_p8 = pnand %p1467_p7, %p1461_p9 }
 0x1ab   : > { %v483_v13 = vpop.f32.mrb[0].mxu0 }
 0x1ac   : > { %v484_v14 = vadd.f32 %v1052_v12, %v483_v13  ;;  %v1098_v15 = vpop.f32.mrb[1].mxu0 }
 0x1ad   : > { %v486_v16 = vpop.f32.mrb[2].mxu0 }
 0x1ae   : > { %v489_v17 = vmax.f32 %v484_v14, 0.0  ;;  %v1099_v18 = vpop.f32.mrb[3].mxu0 }
 0x1b0   : > { %v490_v20 = vpack.c.bf16 %v489_v17, %v489_v17 }
 0x1b2   : > { %1061 = vmatmul.mubr.msk.bf16.vlgmr.msra.gmra.mrb[0].mxu1 %vm547_vm2, %v490_v20  ;;  %1105 = vmatmul.mubr.msk.bf16.vlgmr.msra.gmra.mrb[4].mxu0 %vm547_vm2, %v490_v20 }
 0x1b3   : > { %693 = vmatpush1.bf16.msra.mxu1 %v1268_v19  ;;  %724 = vmatprep.mubr.bf16.mxu1 %v1596_v11 }
 0x1b4   : > { %694 = vmatprep.subr.bf16.mxu1 %v1273_v21  ;;  %1109 = vmatpush3.bf16.msra.mxu0 %v1274_v22 }
 0x1b5   : > { %1110 = vmatprep.subr.bf16.mxu0 %v1594_v2  ;;  %1112 = vmatprep.mubr.msk.bf16.mxu0 %vm1595_vm0, %v1594_v2 }
 0x1b7   : > { %695 = vmatpush1.bf16.msra.mxu1 %v1271_v23 }
 0x1b8   : > { %1111 = vmatpush3.bf16.msra.mxu0 %v1275_v24  ;;  %1116 = vmatprep.subr.bf16.mxu1 %v1594_v2 }
 0x1bb   : > { %1113 = vmatmul.mubr.msk.bf16.vlgmr.msra.gmra.mrb[8].mxu0 %vm547_vm2, %v632_v26 }
 0x1be   : > { %1069 = vmatmul.mubr.msk.bf16.vlgmr.msra.gmra.mrb[0].mxu1 %vm547_vm2, %v632_v26 }
 0x1bf   : > { %1120 = vmatprep.mubr.msk.bf16.mxu1 %vm1595_vm0, %v1594_v2  ;;  %1117 = vmatpush3.bf16.msra.mxu1 %v1276_v27 }
 0x1c0   : > { %1118 = vmatprep.subr.bf16.mxu1 %v1594_v2 }
 0x1c3   : > { %1119 = vmatpush3.bf16.msra.mxu1 %v1277_v28 }
 0x285   : > { %v626_v31 = vpop.f32.mrb[4].mxu0 }
 0x286   : > { %v1106_v32 = vpop.f32.mrb[5].mxu0  ;;  %v627_v2 = vadd.f32 %v626_v31, %v511_v62 }
 0x287   : > { %v629_v34 = vpop.f32.mrb[6].mxu0 }
 0x288   : > { %v1107_v36 = vpop.f32.mrb[7].mxu0 }
 0x28e   : > { %v767_v44 = vpop.f32.mrb[8].mxu0 }
 0x28f   : > { %v1114_v45 = vpop.f32.mrb[9].mxu0  ;;  %v768_v0 = vadd.f32 %v767_v44, %v653_v60 }
 0x290   : > { %v770_v46 = vpop.f32.mrb[10].mxu0 }
 0x291   : > { %v726_v47 = vpop.f32.mrb[0].mxu1  ;;  %v1115_v49 = vpop.f32.mrb[11].mxu0 }
 0x292   : > { %v1125_v50 = vadd.f32 %v1124_v43, %v726_v47  ;;  %v728_v51 = vpop.f32.mrb[1].mxu1 }
 0x293   : > { %v730_v52 = vpop.f32.mrb[2].mxu1  ;;  %v1127_v55 = vadd.f32 %v1126_v48, %v728_v51 }
 0x294   : > { %v1071_v53 = vmul.f32 -1.442695, %v1125_v50  ;;  %v731_v54 = vpop.f32.mrb[3].mxu1 }
 0x295   : > { %v1072_v56 = vmul.f32 -1.442695, %v1127_v55 }
 0x296   : > { %1278 = vpow2.f32 %v1071_v53 }
 0x297   : > { %1280 = vpow2.f32 %v1072_v56 }
 0x2a0   : > { %v1279_v57 = vpop.eup %1278 }
 0x2a1   : > { %v777_v58 = vadd.f32 1.0, %v1279_v57  ;;  %v1281_v61 = vpop.eup %1280 }
 0x2a2   : > { %v784_v63 = vadd.f32 1.0, %v1281_v61 }
 0x2a3   : > { %1282 = vrcp.f32 %v777_v58 }
 0x2a4   : > { %1284 = vrcp.f32 %v784_v63 }
 0x2ad   : > { %v1283_v1 = vpop.eup %1282 }
 0x2ae   : > { %v787_v3 = vmul.f32 %v1283_v1, %v768_v0  ;;  %v1285_v5 = vpop.eup %1284 }
 0x2af   : > { %v790_v6 = vsub.f32 1.0, %v1285_v5  ;;  %v792_v8 = vmul.f32 %v1285_v5, %v432_v25 }
 0x2b0   : > { %v788_v4 = vadd.f32 %v787_v3, %v627_v2 }
 0x2b2   : > { %1286 = vtanh.f32 %v788_v4 }
 0x2bc   : > { %v1287_v7 = vpop.eup %1286 }
 0x2bd   : > { %v791_v9 = vmul.f32 %v1287_v7, %v790_v6 }
 0x2bf   : > { %v793_v10 = vadd.f32 %v792_v8, %v791_v9 }
 0x2c1   : > { %v794_v11 = vpack.c.bf16 %v793_v10, %v793_v10  ;;  %858 = vst [vmem:[#allocation2] sm:$0xff] %v793_v10  ;;  %860 = vst [vmem:[#allocation15] sm:$0xff] %v793_v10 }
 0x2c3   : > { %1121 = vmatmul.mubr.msk.bf16.vlgmr.msra.gmra.mrb[4].mxu1 %vm547_vm2, %v794_v11 }
 0x2c4   : > { %1471 = shalt.err (!%p1468_p8)
}
 0x2c5   : > { %s2050_s16 = sld [smem:[#allocation26_spill]] }
 0x2cb   : > { %s1472_s3 = scalar_lea.hbm %s2050_s16, 128 }
 0x2cc   : > { %p1473_p1 = scmp.ne.s32.totalorder %s2050_s16, %s1472_s3  ;;  %p1478_p2 = scmp.lt.u32.totalorder %s1472_s3, %s2050_s16 }
 0x2ce   : > { %p1474_p3 = pnand %p1473_p1, %p2049_p4 }
 0x2d0   : > { %p1475_p11 = pneg %p1474_p3 }
 0x2d2   : > { %p1480_p10 = pnand %p1478_p2, %p1475_p11 }
 0x2d4   : > { %1483 = shalt.err (!%p1480_p10)
}
 0x2d5   : > { %1156 = dma.vmem_to_hbm [thread:$0]  (%p2049_p4), %s890_s1, 128, %s2050_s16, [#allocation16]   ;;  %v1073_v12 = vld [vmem:[#allocation12 + $0x3] ss:$0 sm:$0xff] }
 0x2d6   : > { %s1078_s21 = sshll.u32 %s1574_s30, 7  ;;  %s876_s22 = sshll.u32 %s1913_s19, 4  ;;  %s1956_s22 = int_to_ptr.vmem [resolvable:$true] %s876_s22 }
 0x2d7   : > { %s2051_s3 = sld [smem:[#allocation25_spill]]  ;;  %s862_s1 = scalar_lea.sflag [#allocation5], %s1892_s7 }
 0x2d8   : > { %s1484_s13 = scalar_lea.vmem %s1956_s22, 128  ;;  %p2052_p13 = scmp.ne.s32.totalorder %s2044_s11, 0 }
 0x2d9   : > { %p1485_p5 = scmp.ne.s32.totalorder %s1956_s22, %s1484_s13  ;;  %s1598_s30 = smov [#allocation14]  }
 0x2da   : > { %s1488_s12 = sshll.u32 %s1598_s30, 4  ;;  %s1489_s12 = int_to_ptr.vmem [resolvable:$false] %s1488_s12 }
 0x2db   : > { %p1486_p6 = pnand %p1485_p5, %p2052_p13  ;;  %s1490_s14 = scalar_lea.vmem %s1489_s12, 256 }
 0x2dc   : > { %p1491_p12 = scmp.lt.s32.totalorder %s1956_s22, %s1489_s12  ;;  %p1492_p0 = scmp.lt.s32.totalorder %s1490_s14, %s1484_s13 }
 0x2dd   : > { %s1954_s15 = scalar_lea.hbm %s2051_s3, %s1078_s21  ;;  %p1487_p9 = pneg %p1486_p6 }
 0x2de   : > { %p1493_p7 = por %p1492_p0, %p1491_p12 }
 0x2e0   : > { %p1494_p8 = pnand %p1493_p7, %p1487_p9 }
 0x396   : > { %v852_v13 = vpop.f32.mrb[4].mxu1 }
 0x397   : > { %v853_v14 = vadd.f32 %v1073_v12, %v852_v13  ;;  %v1122_v15 = vpop.f32.mrb[5].mxu1 }
 0x398   : > { %v855_v16 = vpop.f32.mrb[6].mxu1 }
 0x399   : > { %859 = vst [vmem:[%s1913_s19] sm:$0xff] %v853_v14  ;;  %v1123_v17 = vpop.f32.mrb[7].mxu1 }
 0x39a   : > { %1497 = shalt.err (!%p1494_p8)
}
 0x39b   : > { %s1498_s7 = scalar_lea.hbm %s1954_s15, 128  ;;  %s1502_s18 = scalar_lea.hbm %s2051_s3, 1024 }
 0x39c   : > { %p1499_p1 = scmp.ne.s32.totalorder %s1954_s15, %s1498_s7  ;;  %p1503_p2 = scmp.lt.u32.totalorder %s1954_s15, %s2051_s3 }
 0x39d   : > { %p1504_p10 = scmp.lt.u32.totalorder %s1502_s18, %s1498_s7  ;;  %p1506_p6 = scmp.lt.u32.totalorder %s1498_s7, %s1954_s15 }
 0x39e   : > { %p1500_p3 = pnand %p1499_p1, %p2052_p13 }
 0x39f   : > { %p1505_p5 = por %p1504_p10, %p1503_p2 }
 0x3a0   : > { %p1501_p11 = pneg %p1500_p3 }
 0x3a1   : > { %p1507_p9 = por %p1506_p6, %p1505_p5 }
 0x3a3   : > { %p1508_p12 = pnand %p1507_p9, %p1501_p11 }
 0x3a5   : > { %1511 = shalt.err (!%p1508_p12)
}
 0x3a6   : > { %1154 = dma.vmem_to_hbm [thread:$0]  (%p2052_p13), %s1956_s22, 128, %s1954_s15, %s862_s1  }
 0x3a7   : > { %1553 = dma.done.wait (%p2049_p4), [#allocation16], 128  }
 0x3a8   : > { %1555 = vsyncadd (%p2049_p4), [#allocation16], 4294967168 }
 0x3a9 PF: > { %p1197_p0 = scmp.ge.s32.totalorder %s1582_s10, 2  ;;  %s905_s25 = sand.u32 1, %s1562_s27  }
 0x3aa   : > { %p2053_p7 = scmp.ne.s32.totalorder %s2045_s23, 0  ;;  %s906_s13 = scalar_lea.sflag [#allocation5], %s905_s25 }
 0x3ac   : > { %p1181_p8 = pnand %p1197_p0, %p2053_p7 }
 0x3ae   : > { %1557 = dma.done.wait (!%p1181_p8), %s906_s13, 128  }
 0x3af   : > { %1559 = vsyncadd (!%p1181_p8), %s906_s13, 4294967168  ;;  %s29_s10 = sadd.s32 1, %s1582_s10   ;;  %s2054_s27 = smov %s1566_s28 }
 0x3b0   : > { %p26_p1 = scmp.ge.s32.totalorder %s29_s10, 10   ;;  %s2055_s28 = smov %s1570_s29 }
 0x3b1   : > { %s2056_s29 = smov %s1843_s17  ;;  %s2057_s30 = smov %s1578_s9 }
 0x3b2   : > { %s2058_s9 = smov %s2060_s20  ;;  %28 = sbr.rel (!%p26_p1) target bundleno = 15 (0xf), region = 129 }
 0x3b9   :  { %911 = vsyncpa [#allocation4], 1 }
 0x3ba   :  { %913 = vsyncpa [#allocation4 + $0x1], 1 }
 0x3bb   :  { %914 = vsyncpa [#allocation7], 1 }
 0x3bc   :  { %915 = vsyncpa [#allocation10], 1 }
 0x3bd   :  { %916 = vsyncpa [#allocation13], 1 }
 0x3be   :  { %917 = vsyncpa [#allocation5], 1 }
 0x3bf   :  { %919 = vsyncpa [#allocation5 + $0x1], 1 }
 0x3c0   :  { %920 = vsyncpa [#allocation16], 1 }

</bundles_post_ra>
